<compile_context>
chip_gen: v6e
topology: v6e:2x2x1
jax: 0.10.0
libtpu: 0.0.40
codegen_flags: <defaults>
</compile_context>

<pallas_src>
import jax
import jax.numpy as jnp
from jax import lax
from jax.experimental import pallas as pl
from jax.experimental.pallas import tpu as pltpu


def skipgram_kernel(idx_ref, w1t_ref, w2t_ref, out_ref):
    # idx_ref:  (b_tile, 1) int32 VMEM — token indices for this batch tile
    # w1t_ref:  (V, E)  f32 VMEM — fc1 weight, stored transposed (resident)
    # w2t_ref:  (E, CV) f32 VMEM — fc2 weight, stored transposed, lane-dense
    # out_ref:  (b_tile, CV) f32 output tile
    b_tile = out_ref.shape[0]
    V = w1t_ref.shape[0]

    # fc1(onehot(idx)): build the one-hot with a single vectorized compare and
    # do one (b_tile, V) x (V, E) MXU matmul.  At small V this beats a
    # serialized per-row dynamic gather (which sits on the vector-load slot),
    # and it has no out-of-bounds hazard for bad indices.
    col_ids = lax.broadcasted_iota(jnp.int32, (b_tile, V), 1)
    onehot = (col_ids == idx_ref[...]).astype(jnp.float32)        # (b_tile, V)
    h = jnp.dot(onehot, w1t_ref[...], preferred_element_type=jnp.float32)

    # ReLU hoisted to a single VPU op on the whole (b_tile, E) tile.
    h = jnp.maximum(h, 0.0)

    # fc2: plain (M,K)x(K,N) matmul against the lane-dense (E, CV) weight.
    # (At production shapes on v6e/v7x: cast h / w2t to bf16 here, keep
    #  preferred_element_type=f32; softmax math stays in f32.)
    logits = jnp.dot(h, w2t_ref[...], preferred_element_type=jnp.float32)

    # Numerically stable -log_softmax along the C*V axis (dim=1).
    m = jnp.max(logits, axis=-1, keepdims=True)
    z = logits - m
    lse = jnp.log(jnp.sum(jnp.exp(z), axis=-1, keepdims=True))
    out_ref[...] = lse - z                                         # == -(z - lse)


def skipgram_forward(indices, w1t, w2t, *, b_tile=None):
    """indices: (B,) int32 token ids;
    w1t: (V, E) f32 — fc1 weight pre-transposed once at init;
    w2t: (E, C*V) f32 — fc2 weight pre-transposed once at init (lane-dense).
    Returns (B, C*V) f32 = -log_softmax(relu(onehot @ W1.T) @ W2.T)."""
    B = indices.shape[0]
    V, E = w1t.shape
    E2, CV = w2t.shape
    assert E2 == E

    if b_tile is None:
        # Toy batches: one grid step (no per-step pipeline overhead).
        # Large batches: 256 fills the MXU M dim on v6e/v7x (128+ on v5e).
        b_tile = B if B <= 256 else 256
    assert B % b_tile == 0, "batch must be a multiple of the batch tile"
    assert b_tile == B or b_tile % 8 == 0, "batch tile must be sublane-aligned"
    grid = (B // b_tile,)

    idx2d = indices.reshape(B, 1).astype(jnp.int32)

    cost = pl.CostEstimate(
        flops=2 * B * V * E + 2 * B * E * CV,       # fc1 (one-hot) + fc2 matmuls
        transcendentals=B * CV + B,                 # exp per logit + log per row
        bytes_accessed=(B * 4                       # indices
                        + V * E * 4                 # full W1^T DMA
                        + E * CV * 4                # full W2^T DMA
                        + B * CV * 4),              # output
    )

    return pl.pallas_call(
        skipgram_kernel,
        out_shape=jax.ShapeDtypeStruct((B, CV), jnp.float32),
        grid_spec=pltpu.PrefetchScalarGridSpec(
            num_scalar_prefetch=0,
            grid=grid,
            in_specs=[
                # Per-batch-tile indices.
                pl.BlockSpec((b_tile, 1), lambda i: (i, 0)),
                # Constant block index => weights stay resident in VMEM.
                pl.BlockSpec((V, E), lambda i: (0, 0)),
                pl.BlockSpec((E, CV), lambda i: (0, 0)),
            ],
            # Lane-dense output tile (last dim CV is a multiple of 128).
            out_specs=pl.BlockSpec((b_tile, CV), lambda i: (i, 0)),
        ),
        compiler_params=pltpu.CompilerParams(
            dimension_semantics=("parallel",),      # batch tiles are independent
        ),
        cost_estimate=cost,
    )(idx2d, w1t, w2t)


if __name__ == "__main__":
    # Small, hardware-friendly shapes consistent with the module's __init__.
    VOCAB_SIZE = 128
    EMBEDDING_DIM = 32
    CONTEXT_SIZE = 2
    BATCH = 16

    key = jax.random.PRNGKey(0)
    k_idx, k_w1, k_w2 = jax.random.split(key, 3)

    # PyTorch Linear default init: U(-1/sqrt(fan_in), 1/sqrt(fan_in)),
    # weights stored (out_features, in_features).
    bound1 = 1.0 / jnp.sqrt(VOCAB_SIZE)
    w1 = jax.random.uniform(
        k_w1, (EMBEDDING_DIM, VOCAB_SIZE), jnp.float32, -bound1, bound1
    )
    bound2 = 1.0 / jnp.sqrt(EMBEDDING_DIM)
    w2 = jax.random.uniform(
        k_w2, (CONTEXT_SIZE * VOCAB_SIZE, EMBEDDING_DIM), jnp.float32, -bound2, bound2
    )
    # NOTE: self.em (nn.Embedding) is declared in __init__ but unused in forward.

    # One-time persistent layout choices (done at init, never per call):
    #   fc1 weight stored transposed (V, E); fc2 weight stored transposed
    #   (E, C*V) so the in-kernel matmuls are plain (M,K)x(K,N) and lane-dense.
    w1t = jnp.asarray(w1.T)          # (V, E)
    w2t = jnp.asarray(w2.T)          # (E, C*V)

    indices = jax.random.randint(k_idx, (BATCH,), 0, VOCAB_SIZE, dtype=jnp.int32)

    out = skipgram_forward(indices, w1t, w2t)
    out = jax.block_until_ready(out)

    # Pure-JAX reference check (exact PyTorch forward semantics).
    onehot = jax.nn.one_hot(indices, VOCAB_SIZE, dtype=jnp.float32)
    h_ref = jnp.maximum(onehot @ w1.T, 0.0)
    logits_ref = h_ref @ w2.T
    ref = -jax.nn.log_softmax(logits_ref, axis=1)

    assert out.shape == (BATCH, CONTEXT_SIZE * VOCAB_SIZE)
    assert jnp.allclose(out, ref, atol=1e-5, rtol=1e-5)

    print("KERNEL_OK")
</pallas_src>

<mosaic_0001>
module attributes {stable_mosaic.version = 11 : i64} {
  func.func @skipgram_kernel(%arg0: i32, %arg1: memref<16x1xi32, #tpu.memory_space<vmem>>, %arg2: memref<128x32xf32, #tpu.memory_space<vmem>>, %arg3: memref<32x256xf32, #tpu.memory_space<vmem>>, %arg4: memref<16x256xf32, #tpu.memory_space<vmem>>) attributes {dimension_semantics = [#tpu.dimension_semantics<parallel>], iteration_bounds = array<i64: 1>, scalar_prefetch = 0 : i64, scratch_operands = 0 : i64, tpu.core_type = #tpu.core_type<tc>, window_params = [{transform_indices = @transform_0, window_bounds = array<i64: 16, 1>}, {pipeline_mode = #tpu.pipeline_mode<synchronous>, transform_indices = @transform_1, window_bounds = array<i64: 128, 32>}, {pipeline_mode = #tpu.pipeline_mode<synchronous>, transform_indices = @transform_2, window_bounds = array<i64: 32, 256>}, {transform_indices = @transform_3, window_bounds = array<i64: 16, 256>}]} {
    %0 = tpu.iota {dimensions = array<i32: 1>} : vector<16x128xi32>
    %c0 = arith.constant 0 : index
    %c0_0 = arith.constant 0 : index
    %1 = vector.load %arg1[%c0, %c0_0] : memref<16x1xi32, #tpu.memory_space<vmem>>, vector<16x1xi32>
    %2 = vector.broadcast %1 : vector<16x1xi32> to vector<16x128xi32>
    %3 = arith.cmpi eq, %0, %2 : vector<16x128xi32>
    %4 = arith.extui %3 : vector<16x128xi1> to vector<16x128xi32>
    %5 = arith.sitofp %4 : vector<16x128xi32> to vector<16x128xf32>
    %c0_1 = arith.constant 0 : index
    %c0_2 = arith.constant 0 : index
    %6 = vector.load %arg2[%c0_1, %c0_2] : memref<128x32xf32, #tpu.memory_space<vmem>>, vector<128x32xf32>
    %cst = arith.constant dense<0.000000e+00> : vector<16x32xf32>
    %7 = tpu.matmul %5, %6, %cst {dimension_numbers = #tpu.dot_dimension_numbers<[1], [0], [0], [1], [0, 0, 1, 1], [], []>} : vector<16x128xf32>, vector<128x32xf32>, vector<16x32xf32> -> vector<16x32xf32>
    %cst_3 = arith.constant 0.000000e+00 : f32
    %8 = vector.broadcast %cst_3 : f32 to vector<16x32xf32>
    %9 = arith.maximumf %7, %8 : vector<16x32xf32>
    %c0_4 = arith.constant 0 : index
    %c0_5 = arith.constant 0 : index
    %10 = vector.load %arg3[%c0_4, %c0_5] : memref<32x256xf32, #tpu.memory_space<vmem>>, vector<32x256xf32>
    %cst_6 = arith.constant dense<0.000000e+00> : vector<16x256xf32>
    %11 = tpu.matmul %9, %10, %cst_6 {dimension_numbers = #tpu.dot_dimension_numbers<[1], [0], [0], [1], [0, 0, 1, 1], [], []>} : vector<16x32xf32>, vector<32x256xf32>, vector<16x256xf32> -> vector<16x256xf32>
    %cst_7 = arith.constant dense<0xFF800000> : vector<16xf32>
    %12 = vector.multi_reduction <maximumf>, %11, %cst_7 [1] : vector<16x256xf32> to vector<16xf32>
    %13 = vector.shape_cast %12 : vector<16xf32> to vector<16x1xf32>
    %14 = vector.broadcast %13 : vector<16x1xf32> to vector<16x256xf32>
    %15 = arith.subf %11, %14 : vector<16x256xf32>
    %16 = math.exp %15 : vector<16x256xf32>
    %cst_8 = arith.constant dense<0.000000e+00> : vector<16xf32>
    %17 = vector.multi_reduction <add>, %16, %cst_8 [1] : vector<16x256xf32> to vector<16xf32>
    %18 = vector.shape_cast %17 : vector<16xf32> to vector<16x1xf32>
    %19 = math.log %18 : vector<16x1xf32>
    %20 = vector.broadcast %19 : vector<16x1xf32> to vector<16x256xf32>
    %21 = arith.subf %20, %15 : vector<16x256xf32>
    %c0_9 = arith.constant 0 : index
    %c0_10 = arith.constant 0 : index
    %22 = vector.load %arg4[%c0_9, %c0_10] : memref<16x256xf32, #tpu.memory_space<vmem>>, vector<16x256xf32>
    tpu.vector_store %arg4[%c0_9, %c0_10], %21 {strides = array<i32>} : memref<16x256xf32, #tpu.memory_space<vmem>>, vector<16x256xf32>,
    return
  }
  func.func @transform_0(%arg0: i32) -> (i32, i32) {
    %c0_i32 = arith.constant 0 : i32
    %c0_i32_0 = arith.constant 0 : i32
    return %arg0, %c0_i32 : i32, i32
  }
  func.func @transform_1(%arg0: i32) -> (i32, i32) {
    %c0_i32 = arith.constant 0 : i32
    %c0_i32_0 = arith.constant 0 : i32
    %c0_i32_1 = arith.constant 0 : i32
    return %c0_i32, %c0_i32_0 : i32, i32
  }
  func.func @transform_2(%arg0: i32) -> (i32, i32) {
    %c0_i32 = arith.constant 0 : i32
    %c0_i32_0 = arith.constant 0 : i32
    %c0_i32_1 = arith.constant 0 : i32
    return %c0_i32, %c0_i32_0 : i32, i32
  }
  func.func @transform_3(%arg0: i32) -> (i32, i32) {
    %c0_i32 = arith.constant 0 : i32
    %c0_i32_0 = arith.constant 0 : i32
    return %arg0, %c0_i32 : i32, i32
  }
}

</mosaic_0001>

<bundles_post_ra>
// kernel: tpu_custom_call.1
= control target key start
LH: loop header
LB: loop body
LE: loop exit
PB: predicated region body
PF: predicated region fallthrough
CT: control target
= control target key end

     0   :  { %v368_v2 = vmov 0   ;;  %s475_s0 = inlined_call_operand.vmem [shape: s32[16,1], index: 0, kind: input, shape index: {}]   ;;  %s476_s1 = inlined_call_operand.vmem [shape: f32[128,32], index: 1, kind: input, shape index: {}]   ;;  %s477_s2 = inlined_call_operand.vmem [shape: f32[32,256], index: 2, kind: input, shape index: {}]   ;;  %s478_s3 = inlined_call_operand.hbm [shape: f32[16,256], index: 3, kind: output, shape index: {}]  }
   0x1   :  { %v17_v0 = vld [vmem:[%s475_s0] sm:$0xff]  ;;  %v46_v1 = vld [vmem:[%s476_s1 + $0x78] sm:$0xff]  ;;  %333 = vset.pattern.permute.xlu0 %v368_v2  ;;  %v45_v3 = vld [vmem:[%s476_s1 + $0x70] sm:$0xff] }
   0x2   :  { %292 = vmatprep.subr.mxu0 %v46_v1  ;;  %20 = vperm.xlu0 %333, %v17_v0   ;;  %v44_v4 = vld [vmem:[%s476_s1 + $0x68] sm:$0xff]  ;;  %v43_v6 = vld [vmem:[%s476_s1 + $0x60] sm:$0xff]  ;;  %v42_v7 = vld [vmem:[%s476_s1 + $0x58] sm:$0xff] }
   0x3   :  { %293 = vmatpush3.msra.mxu0 %v46_v1  ;;  %v18_v5 = vld [vmem:[%s475_s0 + $0x8] sm:$0xff]  ;;  %v131_v8 = vld [vmem:[%s477_s2 + $0x38] sm:$0xff]  ;;  %v130_v9 = vld [vmem:[%s477_s2 + $0x30] sm:$0xff] }
   0x4   :  { %294 = vmatprep.subr.mxu0 %v45_v3  ;;  %v129_v10 = vld [vmem:[%s477_s2 + $0x28] sm:$0xff]  ;;  %163 = vmatprep.subr.mxu1 %v131_v8 }
   0x5   :  { %295 = vmatpush3.msra.mxu0 %v45_v3 }
   0x6   :  { %296 = vmatprep.subr.mxu0 %v44_v4  ;;  %23 = vperm.xlu0 %333, %v18_v5  }
   0x7   :  { %297 = vmatpush3.msra.mxu0 %v44_v4 }
   0x8   :  { %298 = vmatprep.subr.mxu0 %v43_v6 }
   0x9   :  { %8 = vsyncpa [#allocation3], 0  ;;  %299 = vmatpush3.msra.mxu0 %v43_v6  ;;  %v41_v11 = vld [vmem:[%s476_s1 + $0x50] sm:$0xff]  ;;  %164 = vmatpush1.msra.mxu1 %v130_v9  ;;  %v40_v12 = vld [vmem:[%s476_s1 + $0x48] sm:$0xff]  ;;  %v15_v22 = vlaneseq  ;;  %v369_v25 = vmov 1.0   ;;  %v370_v32 = vmov 0.0  }
   0xa   :  { %300 = vmatprep.subr.mxu0 %v42_v7  ;;  %165 = vmatprep.subr.mxu1 %v129_v10  ;;  %v39_v13 = vld [vmem:[%s476_s1 + $0x40] sm:$0xff]  ;;  %v38_v14 = vld [vmem:[%s476_s1 + $0x38] sm:$0xff]  ;;  %v37_v15 = vld [vmem:[%s476_s1 + $0x30] sm:$0xff]  ;;  %vm132_vm2 = vcmask 261120  }
   0xb   :  { %301 = vmatpush3.msra.mxu0 %v42_v7  ;;  %v36_v16 = vld [vmem:[%s476_s1 + $0x28] sm:$0xff]  ;;  %v35_v17 = vld [vmem:[%s476_s1 + $0x20] sm:$0xff]  ;;  %v34_v18 = vld [vmem:[%s476_s1 + $0x18] sm:$0xff]  ;;  %v16_v23 = vand.u32 127, %v15_v22  ;;  %203 = vmatprep.mubr.f32.mxu1 %v370_v32 }
   0xc   :  { %302 = vmatprep.subr.mxu0 %v41_v11  ;;  %v33_v19 = vld [vmem:[%s476_s1 + $0x10] sm:$0xff]  ;;  %v32_v20 = vld [vmem:[%s476_s1 + $0x8] sm:$0xff]  ;;  %v31_v21 = vld [vmem:[%s476_s1] sm:$0xff] }
   0xd   :  { %303 = vmatpush3.msra.mxu0 %v41_v11  ;;  %v128_v27 = vld [vmem:[%s477_s2 + $0x20] sm:$0xff]  ;;  %v127_v28 = vld [vmem:[%s477_s2 + $0x18] sm:$0xff]  ;;  %v126_v29 = vld [vmem:[%s477_s2 + $0x10] sm:$0xff] }
   0xe   :  { %304 = vmatprep.subr.mxu0 %v40_v12  ;;  %166 = vmatpush1.msra.mxu1 %v128_v27  ;;  %v125_v30 = vld [vmem:[%s477_s2 + $0x8] sm:$0xff]  ;;  %v124_v31 = vld [vmem:[%s477_s2] sm:$0xff]  ;;  %s371_s2 = smov [#allocation2]  }
   0xf   :  { %305 = vmatpush3.msra.mxu0 %v40_v12  ;;  %167 = vmatprep.subr.mxu1 %v127_v28  ;;  %s257_s7 = sshll.u32 %s371_s2, 4  ;;  %s258_s7 = int_to_ptr.vmem [resolvable:$true] %s257_s7 }
  0x10   :  { %306 = vmatprep.subr.mxu0 %v39_v13  ;;  %168 = vmatpush1.msra.mxu1 %v126_v29  ;;  %s346_s8 = scalar_lea.vmem %s258_s7, 512  ;;  %p351_p1 = scmp.lt.s32.totalorder %s258_s7, %s258_s7 }
  0x11   :  { %307 = vmatpush3.msra.mxu0 %v39_v13  ;;  %169 = vmatprep.subr.mxu1 %v125_v30  ;;  %p347_p0 = scmp.ne.s32.totalorder %s258_s7, %s346_s8  ;;  %p352_p2 = scmp.lt.s32.totalorder %s346_s8, %s346_s8 }
  0x12   :  { %308 = vmatprep.subr.mxu0 %v38_v14  ;;  %170 = vmatpush1.msra.mxu1 %v124_v31 }
  0x13   :  { %309 = vmatpush3.msra.mxu0 %v38_v14  ;;  %p353_p3 = por %p352_p2, %p351_p1 }
  0x14   :  { %310 = vmatprep.subr.mxu0 %v37_v15 }
  0x15   :  { %311 = vmatpush3.msra.mxu0 %v37_v15  ;;  %p354_p4 = pnand %p353_p3, %p347_p0 }
  0x16   :  { %312 = vmatprep.subr.mxu0 %v36_v16 }
  0x17   :  { %313 = vmatpush3.msra.mxu0 %v36_v16 }
  0x18   :  { %314 = vmatprep.subr.mxu0 %v35_v17 }
  0x19   :  { %315 = vmatpush3.msra.mxu0 %v35_v17 }
  0x1a   :  { %316 = vmatprep.subr.mxu0 %v34_v18 }
  0x1b   :  { %317 = vmatpush3.msra.mxu0 %v34_v18 }
  0x1c   :  { %318 = vmatprep.subr.mxu0 %v33_v19 }
  0x1d   :  { %319 = vmatpush3.msra.mxu0 %v33_v19 }
  0x1e   :  { %320 = vmatprep.subr.mxu0 %v32_v20 }
  0x1f   :  { %321 = vmatpush3.msra.mxu0 %v32_v20 }
  0x20   :  { %322 = vmatprep.subr.mxu0 %v31_v21 }
  0x21   :  { %323 = vmatpush3.msra.mxu0 %v31_v21 }
  0x7d   :  { %v21_v24 = vpop.permute.xlu0 %20 }
  0x7e   :  { %vm25_vm0 = vcmp.eq.s32.totalorder %v16_v23, %v21_v24 }
  0x7f   :  { %324 = vmatprep.mubr.msk.f32.mxu0 %vm25_vm0, %v369_v25 }
  0x81   :  { %v24_v26 = vpop.permute.xlu0 %23 }
  0x82   :  { %vm26_vm1 = vcmp.eq.s32.totalorder %v16_v23, %v24_v26 }
  0x83   :  { %325 = vmatmul.mubr.msk.f32.vlgmr.msra.gmra.mxu0 %vm26_vm1, %v369_v25 }
 0x143   :  { %v326_v33 = vpop.f32.mrf.mxu0 }
 0x144   :  { %v123_v36 = vmax.f32 %v326_v33, 0.0 }
 0x145   :  { %v113_v34 = vpop.f32.mrf.mxu0 }
 0x146   :  { %v122_v35 = vmax.f32 %v113_v34, 0.0 }
 0x148   :  { %272 = vmatmul.mubr.msk.f32.vlgmr.msra.gmra.mxu1 %vm132_vm2, %v122_v35 }
 0x149   :  { %209 = vmatprep.mubr.f32.mxu1 %v370_v32 }
 0x14c   :  { %273 = vmatmul.mubr.msk.f32.gmra.mxu1 %vm132_vm2, %v123_v36 }
 0x208   :  { %v205_v37 = vpop.f32.mrf.mxu1 }
 0x20a   :  { %v207_v38 = vpop.f32.mrf.mxu1 }
 0x20b   :  { %v216_v39 = vmax.f32 %v205_v37, %v207_v38 }
 0x20c   :  { %v211_v40 = vpop.f32.mrf.mxu1 }
 0x20d   :  { %217 = vmax.xlane.f32.xlu1 %v216_v39 }
 0x20e   :  { %v213_v41 = vpop.f32.mrf.mxu1 }
 0x20f   :  { %v219_v42 = vmax.f32 %v211_v40, %v213_v41 }
 0x211   :  { %220 = vmax.xlane.f32.xlu1 %v219_v42 }
 0x296   :  { %v218_v43 = vpop.xlane.xlu1 %217 }
 0x297   :  { %v222_v44 = vsub.f32 %v205_v37, %v218_v43  ;;  %v223_v45 = vsub.f32 %v207_v38, %v218_v43 }
 0x299   :  { %v226_v46 = vmul.f32 1.442695, %v222_v44  ;;  %v228_v47 = vmul.f32 1.442695, %v223_v45 }
 0x29a   :  { %v221_v48 = vpop.xlane.xlu1 %220 }
 0x29b   :  { %334 = vpow2.f32 %v226_v46  ;;  %v224_v49 = vsub.f32 %v211_v40, %v221_v48  ;;  %v225_v50 = vsub.f32 %v213_v41, %v221_v48 }
 0x29c   :  { %336 = vpow2.f32 %v228_v47 }
 0x29d   :  { %v230_v51 = vmul.f32 1.442695, %v224_v49  ;;  %v232_v52 = vmul.f32 1.442695, %v225_v50 }
 0x29f   :  { %338 = vpow2.f32 %v230_v51 }
 0x2a0   :  { %340 = vpow2.f32 %v232_v52 }
 0x2a8   :  { %v335_v53 = vpop.eup %334 }
 0x2a9   :  { %v337_v54 = vpop.eup %336 }
 0x2aa   :  { %v234_v55 = vadd.f32 %v337_v54, %v335_v53 }
 0x2ac   :  { %v339_v56 = vpop.eup %338  ;;  %235 = vadd.xlane.f32.xlu0 %v234_v55 }
 0x2ad   :  { %v341_v57 = vpop.eup %340 }
 0x2ae   :  { %v237_v58 = vadd.f32 %v341_v57, %v339_v56 }
 0x2b0   :  { %238 = vadd.xlane.f32.xlu1 %v237_v58 }
 0x335   :  { %v236_v59 = vpop.xlane.xlu0 %235 }
 0x336   :  { %342 = vlog2.f32 %v236_v59 }
 0x339   :  { %v239_v60 = vpop.xlane.xlu1 %238 }
 0x33a   :  { %344 = vlog2.f32 %v239_v60 }
 0x343   :  { %v343_v61 = vpop.eup %342 }
 0x344   :  { %v241_v62 = vmul.f32 0.6931472, %v343_v61 }
 0x346   :  { %v244_v63 = vsub.f32 %v241_v62, %v222_v44  ;;  %v245_v0 = vsub.f32 %v241_v62, %v223_v45 }
 0x347   :  { %v345_v1 = vpop.eup %344 }
 0x348   :  { %248 = vst [vmem:[#allocation2] sm:$0xff] %v244_v63  ;;  %249 = vst [vmem:[#allocation2 + $0x8] sm:$0xff] %v245_v0  ;;  %v243_v2 = vmul.f32 0.6931472, %v345_v1 }
 0x34a   :  { %v246_v3 = vsub.f32 %v243_v2, %v224_v49  ;;  %v247_v4 = vsub.f32 %v243_v2, %v225_v50 }
 0x34c   :  { %250 = vst [vmem:[#allocation2 + $0x10] sm:$0xff] %v246_v3  ;;  %251 = vst [vmem:[#allocation2 + $0x18] sm:$0xff] %v247_v4 }
 0x34d   :  { %357 = shalt.err (!%p354_p4)
}
 0x34e   :  { %s372_s9 = smov 256   ;;  %s373_s10 = smov 16  }
 0x34f   :  { %263 = dma.vmem_to_hbm [thread:$0]  %s258_s7, 512, %s478_s3, [#allocation3], %s372_s9, %s372_s9, %s373_s10  }
 0x350   :  { %366 = dma.done.wait [#allocation3], 512  }
 0x351   :  { %367 = vsyncadd [#allocation3], 4294966784 }
 0x352   :  { %267 = vsyncpa [#allocation3], 1 }

</bundles_post_ra>
